<compile_context>
chip_gen: v7x
topology: tpu7x:2x2x1
jax: 0.10.0
libtpu: 0.0.40
codegen_flags: <defaults>
</compile_context>

<pallas_src>
import jax
import jax.numpy as jnp
from jax.experimental import pallas as pl
from jax.experimental.pallas import tpu as pltpu


def _vmem_capacity_bytes():
    try:
        return int(pltpu.get_tpu_info().vmem_capacity_bytes)
    except Exception:
        return 64 * 1024 * 1024  # conservative: assume v7x's 64 MiB per TensorCore


def _pick_batch_tile(B, in_row_bytes, out_row_bytes, vmem_cap):
    """Rows per grid step.  Batch is the sublane axis of the 2-D blocks, so the
    tile is kept 8-row aligned (tiny batches are handled by padding in the
    wrapper)."""
    if B < 8:
        return 8  # wrapper pads the batch to 16 rows -> grid of 2 aligned steps
    budget = vmem_cap // 2                          # headroom for scratch/compiler
    per_row = 2 * (in_row_bytes + out_row_bytes)    # double-buffered in + out tiles
    max_rows = max(8, (budget // per_row) // 8 * 8)
    # Target a ~4 MiB output tile (tile-sweep sweet spot for mem-bound kernels).
    target = max(8, ((4 << 20) // max(out_row_bytes, 1)) // 8 * 8)
    tb = min(max_rows, target)
    # Keep >= 2 grid steps so both v7x TensorCores get work when possible.
    half = max(8, ((B // 2 + 7) // 8) * 8)
    return min(tb, half)


def _make_kernel(C_in, C_out, HW, use_registers):
    def kernel(x_ref, w_ref, b_ref, o_ref):
        # x_ref: (TB, C_in*HW)   VMEM, source dtype (upcast to f32 in-kernel)
        # w_ref: (C_out*C_in,)   SMEM, f32 scalars
        # b_ref: (C_out,)        SMEM, f32 scalars
        # o_ref: (TB, C_out*HW)  VMEM, lane-dense flattened output
        TB = x_ref.shape[0]

        def conv_chunk(o):
            # "self.seq" stand-in: 1x1 conv over channels (+bias) + ReLU as VPU
            # broadcast FMAs (K=M=C_in tiny -> MXU would be <1% utilized).
            # Per-channel slices are re-loaded here (VMEM re-loads are cheap;
            # hoisting them across the C_out loop would spill for large tiles).
            acc = x_ref[:, 0:HW].astype(jnp.float32) * w_ref[0 * C_in + 0] if False else None
            acc = x_ref[:, 0:HW].astype(jnp.float32) * w_ref[o * C_in + 0]
            for c in range(1, C_in):
                acc = acc + (
                    x_ref[:, c * HW:(c + 1) * HW].astype(jnp.float32)
                    * w_ref[o * C_in + c]
                )
            return jnp.maximum(acc + b_ref[o], 0.0)  # (TB, HW)

        if use_registers:
            # Small tile: keep chunks in vregs; write o_ref exactly once with the
            # final softmax result (avoids the stage-then-overwrite store pass).
            ys = []
            m = jnp.full((TB, 1), -jnp.inf, dtype=jnp.float32)
            for o in range(C_out):
                yo = conv_chunk(o)
                ys.append(yo)
                m = jnp.maximum(m, jnp.max(yo, axis=-1, keepdims=True))
            es = []
            s = jnp.zeros((TB, 1), dtype=jnp.float32)
            for yo in ys:
                e = jnp.exp(yo - m)
                es.append(e)
                s = s + jnp.sum(e, axis=-1, keepdims=True)
            r = pl.reciprocal(s, approx=False)
            for o, e in enumerate(es):
                o_ref[:, o * HW:(o + 1) * HW] = (e * r).astype(o_ref.dtype)
        else:
            # Large tile: stage ReLU'd chunks in the VMEM output tile (register
            # residency would spill), then run softmax chunk-by-chunk so live
            # ranges stay bounded.
            m = jnp.full((TB, 1), -jnp.inf, dtype=jnp.float32)
            for o in range(C_out):
                yo = conv_chunk(o)
                o_ref[:, o * HW:(o + 1) * HW] = yo.astype(o_ref.dtype)
                m = jnp.maximum(m, jnp.max(yo, axis=-1, keepdims=True))
            s = jnp.zeros((TB, 1), dtype=jnp.float32)
            for o in range(C_out):
                e = jnp.exp(o_ref[:, o * HW:(o + 1) * HW].astype(jnp.float32) - m)
                o_ref[:, o * HW:(o + 1) * HW] = e.astype(o_ref.dtype)
                s = s + jnp.sum(e, axis=-1, keepdims=True)
            r = pl.reciprocal(s, approx=False)
            for o in range(C_out):
                o_ref[:, o * HW:(o + 1) * HW] = (
                    o_ref[:, o * HW:(o + 1) * HW].astype(jnp.float32) * r
                ).astype(o_ref.dtype)

    return kernel


def netbase_forward(x_nchw, w, b, tb=None):
    B, C_in, H, W = x_nchw.shape
    C_out = w.shape[0]
    HW = H * W
    feat_in = C_in * HW
    feat_out = C_out * HW

    # Flatten channels into the lane axis (free minor-dim merge, no dtype cast
    # of x -- the kernel upcasts internally).  With HW a multiple of 128 all
    # per-channel slices and output chunks are 128-lane aligned.
    x2 = x_nchw.reshape(B, feat_in)
    w1 = w.reshape(C_out * C_in).astype(jnp.float32)   # 1-D SMEM (64 B, not 4 KiB)
    b1 = b.reshape(C_out).astype(jnp.float32)

    out_dtype = x_nchw.dtype
    in_row_bytes = feat_in * x2.dtype.itemsize
    out_row_bytes = feat_out * jnp.dtype(out_dtype).itemsize

    vmem_cap = _vmem_capacity_bytes()
    if tb is None:
        tb = _pick_batch_tile(B, in_row_bytes, out_row_bytes, vmem_cap)

    # Tiny batches: pad to 16 rows so blocks are 8-row aligned and the grid has
    # >= 2 steps (keeps the second v7x TensorCore busy); padded rows (zeros)
    # produce harmless uniform-softmax rows that are sliced off below.
    B_pad = B
    if B < 8:
        tb = 8
        B_pad = 16
        x2 = jnp.pad(x2, ((0, B_pad - B), (0, 0)))

    grid = (pl.cdiv(B_pad, tb),)

    # Small tiles -> register path; large tiles -> VMEM-staging path.
    use_registers = tb * feat_out * 4 <= (64 << 10)
    kernel = _make_kernel(C_in, C_out, HW, use_registers)

    # Generation-aware VMEM limit: enough for double-buffered in+out tiles plus
    # margin, never above 3/4 of this generation's physical VMEM.
    needed = 2 * tb * (in_row_bytes + out_row_bytes) + (4 << 20)
    vmem_limit = int(min(vmem_cap * 3 // 4, max(needed, 32 << 20)))

    out = pl.pallas_call(
        kernel,
        out_shape=jax.ShapeDtypeStruct((B_pad, feat_out), out_dtype),
        grid_spec=pltpu.PrefetchScalarGridSpec(
            num_scalar_prefetch=0,
            grid=grid,
            in_specs=[
                pl.BlockSpec((tb, feat_in), lambda i: (i, 0)),
                pl.BlockSpec(memory_space=pltpu.MemorySpace.SMEM),   # weights
                pl.BlockSpec(memory_space=pltpu.MemorySpace.SMEM),   # bias
            ],
            out_specs=pl.BlockSpec((tb, feat_out), lambda i: (i, 0)),
        ),
        compiler_params=pltpu.CompilerParams(
            dimension_semantics=("parallel",),
            vmem_limit_bytes=vmem_limit,
        ),
    )(x2, w1, b1)

    # Drop padded rows; already in torch.flatten(x, 1) order: (B, C_out*H*W).
    return out[:B]


def reference_forward(x_nchw, w, b):
    # Pure-JAX reference for correctness checking.
    B, C_in, H, W = x_nchw.shape
    C_out = w.shape[0]
    x3 = x_nchw.reshape(B, C_in, H * W).astype(jnp.float32)
    y = jnp.einsum("oc,bch->boh", w.astype(jnp.float32), x3) + b.reshape(1, C_out, 1)
    y = jnp.maximum(y, 0.0)
    return jax.nn.softmax(y.reshape(B, -1), axis=-1)


if __name__ == "__main__":
    B, C_in, H, W = 2, 4, 16, 16
    C_out = 4

    key = jax.random.PRNGKey(0)
    kx, kw, kb = jax.random.split(key, 3)
    x = jax.random.normal(kx, (B, C_in, H, W), dtype=jnp.float32)
    w = jax.random.normal(kw, (C_out, C_in), dtype=jnp.float32) * 0.1
    b = jax.random.normal(kb, (C_out,), dtype=jnp.float32) * 0.01

    out = jax.block_until_ready(netbase_forward(x, w, b))
    ref = reference_forward(x, w, b)

    assert out.shape == (B, C_out * H * W)
    assert jnp.allclose(out, ref, atol=1e-5, rtol=1e-5), "mismatch vs reference"
    # softmax rows sum to 1
    assert jnp.allclose(jnp.sum(out, axis=-1), jnp.ones((B,)), atol=1e-5)

    print("KERNEL_OK")
</pallas_src>

<mosaic_0001>
module attributes {stable_mosaic.version = 11 : i64} {
  func.func @kernel(%arg0: i32, %arg1: memref<8x1024xf32, #tpu.memory_space<vmem>>, %arg2: memref<16xf32, #tpu.memory_space<smem>>, %arg3: memref<4xf32, #tpu.memory_space<smem>>, %arg4: memref<8x1024xf32, #tpu.memory_space<vmem>>) attributes {dimension_semantics = [#tpu.dimension_semantics<parallel>], iteration_bounds = array<i64: 2>, scalar_prefetch = 0 : i64, scratch_operands = 0 : i64, tpu.core_type = #tpu.core_type<tc>, window_params = [{transform_indices = @transform_0, window_bounds = array<i64: 8, 1024>}, {transform_indices = @transform_1, window_bounds = array<i64: 16>}, {transform_indices = @transform_2, window_bounds = array<i64: 4>}, {transform_indices = @transform_3, window_bounds = array<i64: 8, 1024>}]} {
    %cst = arith.constant 0xFF800000 : f32
    %0 = vector.broadcast %cst : f32 to vector<8x1xf32>
    %c0 = arith.constant 0 : index
    %c0_0 = arith.constant 0 : index
    %1 = vector.load %arg1[%c0, %c0_0] : memref<8x1024xf32, #tpu.memory_space<vmem>>, vector<8x256xf32>
    %c0_1 = arith.constant 0 : index
    %2 = memref.load %arg2[%c0_1] : memref<16xf32, #tpu.memory_space<smem>>
    %3 = vector.broadcast %2 : f32 to vector<8x256xf32>
    %4 = arith.mulf %1, %3 : vector<8x256xf32>
    %c0_2 = arith.constant 0 : index
    %c256 = arith.constant 256 : index
    %5 = vector.load %arg1[%c0_2, %c256] : memref<8x1024xf32, #tpu.memory_space<vmem>>, vector<8x256xf32>
    %c1 = arith.constant 1 : index
    %6 = memref.load %arg2[%c1] : memref<16xf32, #tpu.memory_space<smem>>
    %7 = vector.broadcast %6 : f32 to vector<8x256xf32>
    %8 = arith.mulf %5, %7 : vector<8x256xf32>
    %9 = arith.addf %4, %8 : vector<8x256xf32>
    %c0_3 = arith.constant 0 : index
    %c512 = arith.constant 512 : index
    %10 = vector.load %arg1[%c0_3, %c512] : memref<8x1024xf32, #tpu.memory_space<vmem>>, vector<8x256xf32>
    %c2 = arith.constant 2 : index
    %11 = memref.load %arg2[%c2] : memref<16xf32, #tpu.memory_space<smem>>
    %12 = vector.broadcast %11 : f32 to vector<8x256xf32>
    %13 = arith.mulf %10, %12 : vector<8x256xf32>
    %14 = arith.addf %9, %13 : vector<8x256xf32>
    %c0_4 = arith.constant 0 : index
    %c768 = arith.constant 768 : index
    %15 = vector.load %arg1[%c0_4, %c768] : memref<8x1024xf32, #tpu.memory_space<vmem>>, vector<8x256xf32>
    %c3 = arith.constant 3 : index
    %16 = memref.load %arg2[%c3] : memref<16xf32, #tpu.memory_space<smem>>
    %17 = vector.broadcast %16 : f32 to vector<8x256xf32>
    %18 = arith.mulf %15, %17 : vector<8x256xf32>
    %19 = arith.addf %14, %18 : vector<8x256xf32>
    %c0_5 = arith.constant 0 : index
    %20 = memref.load %arg3[%c0_5] : memref<4xf32, #tpu.memory_space<smem>>
    %21 = vector.broadcast %20 : f32 to vector<8x256xf32>
    %22 = arith.addf %19, %21 : vector<8x256xf32>
    %cst_6 = arith.constant 0.000000e+00 : f32
    %23 = vector.broadcast %cst_6 : f32 to vector<8x256xf32>
    %24 = arith.maximumf %22, %23 : vector<8x256xf32>
    %cst_7 = arith.constant dense<0xFF800000> : vector<8xf32>
    %25 = vector.multi_reduction <maximumf>, %24, %cst_7 [1] : vector<8x256xf32> to vector<8xf32>
    %26 = vector.shape_cast %25 : vector<8xf32> to vector<8x1xf32>
    %27 = arith.maximumf %0, %26 : vector<8x1xf32>
    %c0_8 = arith.constant 0 : index
    %c0_9 = arith.constant 0 : index
    %28 = vector.load %arg1[%c0_8, %c0_9] : memref<8x1024xf32, #tpu.memory_space<vmem>>, vector<8x256xf32>
    %c4 = arith.constant 4 : index
    %29 = memref.load %arg2[%c4] : memref<16xf32, #tpu.memory_space<smem>>
    %30 = vector.broadcast %29 : f32 to vector<8x256xf32>
    %31 = arith.mulf %28, %30 : vector<8x256xf32>
    %c0_10 = arith.constant 0 : index
    %c256_11 = arith.constant 256 : index
    %32 = vector.load %arg1[%c0_10, %c256_11] : memref<8x1024xf32, #tpu.memory_space<vmem>>, vector<8x256xf32>
    %c5 = arith.constant 5 : index
    %33 = memref.load %arg2[%c5] : memref<16xf32, #tpu.memory_space<smem>>
    %34 = vector.broadcast %33 : f32 to vector<8x256xf32>
    %35 = arith.mulf %32, %34 : vector<8x256xf32>
    %36 = arith.addf %31, %35 : vector<8x256xf32>
    %c0_12 = arith.constant 0 : index
    %c512_13 = arith.constant 512 : index
    %37 = vector.load %arg1[%c0_12, %c512_13] : memref<8x1024xf32, #tpu.memory_space<vmem>>, vector<8x256xf32>
    %c6 = arith.constant 6 : index
    %38 = memref.load %arg2[%c6] : memref<16xf32, #tpu.memory_space<smem>>
    %39 = vector.broadcast %38 : f32 to vector<8x256xf32>
    %40 = arith.mulf %37, %39 : vector<8x256xf32>
    %41 = arith.addf %36, %40 : vector<8x256xf32>
    %c0_14 = arith.constant 0 : index
    %c768_15 = arith.constant 768 : index
    %42 = vector.load %arg1[%c0_14, %c768_15] : memref<8x1024xf32, #tpu.memory_space<vmem>>, vector<8x256xf32>
    %c7 = arith.constant 7 : index
    %43 = memref.load %arg2[%c7] : memref<16xf32, #tpu.memory_space<smem>>
    %44 = vector.broadcast %43 : f32 to vector<8x256xf32>
    %45 = arith.mulf %42, %44 : vector<8x256xf32>
    %46 = arith.addf %41, %45 : vector<8x256xf32>
    %c1_16 = arith.constant 1 : index
    %47 = memref.load %arg3[%c1_16] : memref<4xf32, #tpu.memory_space<smem>>
    %48 = vector.broadcast %47 : f32 to vector<8x256xf32>
    %49 = arith.addf %46, %48 : vector<8x256xf32>
    %cst_17 = arith.constant 0.000000e+00 : f32
    %50 = vector.broadcast %cst_17 : f32 to vector<8x256xf32>
    %51 = arith.maximumf %49, %50 : vector<8x256xf32>
    %cst_18 = arith.constant dense<0xFF800000> : vector<8xf32>
    %52 = vector.multi_reduction <maximumf>, %51, %cst_18 [1] : vector<8x256xf32> to vector<8xf32>
    %53 = vector.shape_cast %52 : vector<8xf32> to vector<8x1xf32>
    %54 = arith.maximumf %27, %53 : vector<8x1xf32>
    %c0_19 = arith.constant 0 : index
    %c0_20 = arith.constant 0 : index
    %55 = vector.load %arg1[%c0_19, %c0_20] : memref<8x1024xf32, #tpu.memory_space<vmem>>, vector<8x256xf32>
    %c8 = arith.constant 8 : index
    %56 = memref.load %arg2[%c8] : memref<16xf32, #tpu.memory_space<smem>>
    %57 = vector.broadcast %56 : f32 to vector<8x256xf32>
    %58 = arith.mulf %55, %57 : vector<8x256xf32>
    %c0_21 = arith.constant 0 : index
    %c256_22 = arith.constant 256 : index
    %59 = vector.load %arg1[%c0_21, %c256_22] : memref<8x1024xf32, #tpu.memory_space<vmem>>, vector<8x256xf32>
    %c9 = arith.constant 9 : index
    %60 = memref.load %arg2[%c9] : memref<16xf32, #tpu.memory_space<smem>>
    %61 = vector.broadcast %60 : f32 to vector<8x256xf32>
    %62 = arith.mulf %59, %61 : vector<8x256xf32>
    %63 = arith.addf %58, %62 : vector<8x256xf32>
    %c0_23 = arith.constant 0 : index
    %c512_24 = arith.constant 512 : index
    %64 = vector.load %arg1[%c0_23, %c512_24] : memref<8x1024xf32, #tpu.memory_space<vmem>>, vector<8x256xf32>
    %c10 = arith.constant 10 : index
    %65 = memref.load %arg2[%c10] : memref<16xf32, #tpu.memory_space<smem>>
    %66 = vector.broadcast %65 : f32 to vector<8x256xf32>
    %67 = arith.mulf %64, %66 : vector<8x256xf32>
    %68 = arith.addf %63, %67 : vector<8x256xf32>
    %c0_25 = arith.constant 0 : index
    %c768_26 = arith.constant 768 : index
    %69 = vector.load %arg1[%c0_25, %c768_26] : memref<8x1024xf32, #tpu.memory_space<vmem>>, vector<8x256xf32>
    %c11 = arith.constant 11 : index
    %70 = memref.load %arg2[%c11] : memref<16xf32, #tpu.memory_space<smem>>
    %71 = vector.broadcast %70 : f32 to vector<8x256xf32>
    %72 = arith.mulf %69, %71 : vector<8x256xf32>
    %73 = arith.addf %68, %72 : vector<8x256xf32>
    %c2_27 = arith.constant 2 : index
    %74 = memref.load %arg3[%c2_27] : memref<4xf32, #tpu.memory_space<smem>>
    %75 = vector.broadcast %74 : f32 to vector<8x256xf32>
    %76 = arith.addf %73, %75 : vector<8x256xf32>
    %cst_28 = arith.constant 0.000000e+00 : f32
    %77 = vector.broadcast %cst_28 : f32 to vector<8x256xf32>
    %78 = arith.maximumf %76, %77 : vector<8x256xf32>
    %cst_29 = arith.constant dense<0xFF800000> : vector<8xf32>
    %79 = vector.multi_reduction <maximumf>, %78, %cst_29 [1] : vector<8x256xf32> to vector<8xf32>
    %80 = vector.shape_cast %79 : vector<8xf32> to vector<8x1xf32>
    %81 = arith.maximumf %54, %80 : vector<8x1xf32>
    %c0_30 = arith.constant 0 : index
    %c0_31 = arith.constant 0 : index
    %82 = vector.load %arg1[%c0_30, %c0_31] : memref<8x1024xf32, #tpu.memory_space<vmem>>, vector<8x256xf32>
    %c12 = arith.constant 12 : index
    %83 = memref.load %arg2[%c12] : memref<16xf32, #tpu.memory_space<smem>>
    %84 = vector.broadcast %83 : f32 to vector<8x256xf32>
    %85 = arith.mulf %82, %84 : vector<8x256xf32>
    %c0_32 = arith.constant 0 : index
    %c256_33 = arith.constant 256 : index
    %86 = vector.load %arg1[%c0_32, %c256_33] : memref<8x1024xf32, #tpu.memory_space<vmem>>, vector<8x256xf32>
    %c13 = arith.constant 13 : index
    %87 = memref.load %arg2[%c13] : memref<16xf32, #tpu.memory_space<smem>>
    %88 = vector.broadcast %87 : f32 to vector<8x256xf32>
    %89 = arith.mulf %86, %88 : vector<8x256xf32>
    %90 = arith.addf %85, %89 : vector<8x256xf32>
    %c0_34 = arith.constant 0 : index
    %c512_35 = arith.constant 512 : index
    %91 = vector.load %arg1[%c0_34, %c512_35] : memref<8x1024xf32, #tpu.memory_space<vmem>>, vector<8x256xf32>
    %c14 = arith.constant 14 : index
    %92 = memref.load %arg2[%c14] : memref<16xf32, #tpu.memory_space<smem>>
    %93 = vector.broadcast %92 : f32 to vector<8x256xf32>
    %94 = arith.mulf %91, %93 : vector<8x256xf32>
    %95 = arith.addf %90, %94 : vector<8x256xf32>
    %c0_36 = arith.constant 0 : index
    %c768_37 = arith.constant 768 : index
    %96 = vector.load %arg1[%c0_36, %c768_37] : memref<8x1024xf32, #tpu.memory_space<vmem>>, vector<8x256xf32>
    %c15 = arith.constant 15 : index
    %97 = memref.load %arg2[%c15] : memref<16xf32, #tpu.memory_space<smem>>
    %98 = vector.broadcast %97 : f32 to vector<8x256xf32>
    %99 = arith.mulf %96, %98 : vector<8x256xf32>
    %100 = arith.addf %95, %99 : vector<8x256xf32>
    %c3_38 = arith.constant 3 : index
    %101 = memref.load %arg3[%c3_38] : memref<4xf32, #tpu.memory_space<smem>>
    %102 = vector.broadcast %101 : f32 to vector<8x256xf32>
    %103 = arith.addf %100, %102 : vector<8x256xf32>
    %cst_39 = arith.constant 0.000000e+00 : f32
    %104 = vector.broadcast %cst_39 : f32 to vector<8x256xf32>
    %105 = arith.maximumf %103, %104 : vector<8x256xf32>
    %cst_40 = arith.constant dense<0xFF800000> : vector<8xf32>
    %106 = vector.multi_reduction <maximumf>, %105, %cst_40 [1] : vector<8x256xf32> to vector<8xf32>
    %107 = vector.shape_cast %106 : vector<8xf32> to vector<8x1xf32>
    %108 = arith.maximumf %81, %107 : vector<8x1xf32>
    %cst_41 = arith.constant 0.000000e+00 : f32
    %109 = vector.broadcast %cst_41 : f32 to vector<8x1xf32>
    %110 = vector.broadcast %108 : vector<8x1xf32> to vector<8x256xf32>
    %111 = arith.subf %24, %110 : vector<8x256xf32>
    %112 = math.exp %111 : vector<8x256xf32>
    %cst_42 = arith.constant dense<0.000000e+00> : vector<8xf32>
    %113 = vector.multi_reduction <add>, %112, %cst_42 [1] : vector<8x256xf32> to vector<8xf32>
    %114 = vector.shape_cast %113 : vector<8xf32> to vector<8x1xf32>
    %115 = arith.addf %109, %114 : vector<8x1xf32>
    %116 = vector.broadcast %108 : vector<8x1xf32> to vector<8x256xf32>
    %117 = arith.subf %51, %116 : vector<8x256xf32>
    %118 = math.exp %117 : vector<8x256xf32>
    %cst_43 = arith.constant dense<0.000000e+00> : vector<8xf32>
    %119 = vector.multi_reduction <add>, %118, %cst_43 [1] : vector<8x256xf32> to vector<8xf32>
    %120 = vector.shape_cast %119 : vector<8xf32> to vector<8x1xf32>
    %121 = arith.addf %115, %120 : vector<8x1xf32>
    %122 = vector.broadcast %108 : vector<8x1xf32> to vector<8x256xf32>
    %123 = arith.subf %78, %122 : vector<8x256xf32>
    %124 = math.exp %123 : vector<8x256xf32>
    %cst_44 = arith.constant dense<0.000000e+00> : vector<8xf32>
    %125 = vector.multi_reduction <add>, %124, %cst_44 [1] : vector<8x256xf32> to vector<8xf32>
    %126 = vector.shape_cast %125 : vector<8xf32> to vector<8x1xf32>
    %127 = arith.addf %121, %126 : vector<8x1xf32>
    %128 = vector.broadcast %108 : vector<8x1xf32> to vector<8x256xf32>
    %129 = arith.subf %105, %128 : vector<8x256xf32>
    %130 = math.exp %129 : vector<8x256xf32>
    %cst_45 = arith.constant dense<0.000000e+00> : vector<8xf32>
    %131 = vector.multi_reduction <add>, %130, %cst_45 [1] : vector<8x256xf32> to vector<8xf32>
    %132 = vector.shape_cast %131 : vector<8xf32> to vector<8x1xf32>
    %133 = arith.addf %127, %132 : vector<8x1xf32>
    %134 = tpu.reciprocal %133 : vector<8x1xf32> -> vector<8x1xf32>
    %135 = vector.broadcast %134 : vector<8x1xf32> to vector<8x256xf32>
    %136 = arith.mulf %112, %135 : vector<8x256xf32>
    %c0_46 = arith.constant 0 : index
    %c0_47 = arith.constant 0 : index
    %137 = vector.load %arg4[%c0_46, %c0_47] : memref<8x1024xf32, #tpu.memory_space<vmem>>, vector<8x256xf32>
    tpu.vector_store %arg4[%c0_46, %c0_47], %136 {strides = array<i32>} : memref<8x1024xf32, #tpu.memory_space<vmem>>, vector<8x256xf32>,
    %138 = vector.broadcast %134 : vector<8x1xf32> to vector<8x256xf32>
    %139 = arith.mulf %118, %138 : vector<8x256xf32>
    %c0_48 = arith.constant 0 : index
    %c256_49 = arith.constant 256 : index
    %140 = vector.load %arg4[%c0_48, %c256_49] : memref<8x1024xf32, #tpu.memory_space<vmem>>, vector<8x256xf32>
    tpu.vector_store %arg4[%c0_48, %c256_49], %139 {strides = array<i32>} : memref<8x1024xf32, #tpu.memory_space<vmem>>, vector<8x256xf32>,
    %141 = vector.broadcast %134 : vector<8x1xf32> to vector<8x256xf32>
    %142 = arith.mulf %124, %141 : vector<8x256xf32>
    %c0_50 = arith.constant 0 : index
    %c512_51 = arith.constant 512 : index
    %143 = vector.load %arg4[%c0_50, %c512_51] : memref<8x1024xf32, #tpu.memory_space<vmem>>, vector<8x256xf32>
    tpu.vector_store %arg4[%c0_50, %c512_51], %142 {strides = array<i32>} : memref<8x1024xf32, #tpu.memory_space<vmem>>, vector<8x256xf32>,
    %144 = vector.broadcast %134 : vector<8x1xf32> to vector<8x256xf32>
    %145 = arith.mulf %130, %144 : vector<8x256xf32>
    %c0_52 = arith.constant 0 : index
    %c768_53 = arith.constant 768 : index
    %146 = vector.load %arg4[%c0_52, %c768_53] : memref<8x1024xf32, #tpu.memory_space<vmem>>, vector<8x256xf32>
    tpu.vector_store %arg4[%c0_52, %c768_53], %145 {strides = array<i32>} : memref<8x1024xf32, #tpu.memory_space<vmem>>, vector<8x256xf32>,
    return
  }
  func.func @transform_0(%arg0: i32) -> (i32, i32) {
    %c0_i32 = arith.constant 0 : i32
    %c0_i32_0 = arith.constant 0 : i32
    return %arg0, %c0_i32 : i32, i32
  }
  func.func @transform_1(%arg0: i32) -> i32 {
    %c0_i32 = arith.constant 0 : i32
    %c0_i32_0 = arith.constant 0 : i32
    return %c0_i32 : i32
  }
  func.func @transform_2(%arg0: i32) -> i32 {
    %c0_i32 = arith.constant 0 : i32
    %c0_i32_0 = arith.constant 0 : i32
    return %c0_i32 : i32
  }
  func.func @transform_3(%arg0: i32) -> (i32, i32) {
    %c0_i32 = arith.constant 0 : i32
    %c0_i32_0 = arith.constant 0 : i32
    return %arg0, %c0_i32 : i32, i32
  }
}

</mosaic_0001>

<bundles_post_ra>
// kernel: tpu_custom_call.1
= control target key start
LH: loop header
LB: loop body
LE: loop exit
PB: predicated region body
PF: predicated region fallthrough
CT: control target
= control target key end

     0   :  { %8 = vsyncpa [#allocation3], 0  ;;  %s1105_s0 = inlined_call_operand.hbm [shape: f32[16,1024], index: 0, kind: input, shape index: {}]   ;;  %s1106_s1 = inlined_call_operand.vmem [shape: f32[16], index: 1, kind: input, shape index: {}]   ;;  %s1107_s2 = inlined_call_operand.vmem [shape: f32[4], index: 2, kind: input, shape index: {}]   ;;  %s1108_s3 = inlined_call_operand.hbm [shape: f32[16,1024], index: 3, kind: output, shape index: {}]  }
   0x1   :  { %10 = vsyncpa [#allocation3 + $0x1], 0 }
   0x2   :  { %11 = vsyncpa [#allocation5], 0 }
   0x3   :  { %12 = vsyncpa [#allocation8], 0 }
   0x4   :  { %13 = vsyncpa [#allocation4], 0 }
   0x5   :  { %15 = vsyncpa [#allocation4 + $0x1], 0  ;;  %s796_s12 = smov 0   ;;  %s798_s13 = smov 0  }
   0x6   :  { %s800_s14 = smov 0   ;;  %s802_s15 = smov 0  }
   0x7 LB: > { %s817_s16 = sadd.s32 4294967295, %s770_s15   ;;  %s513_s17 = sadd.s32 4294967294, %s770_s15   ;;  %s770_s15 = sphi %s802_s15, %s1130_s15   ;;  %s766_s14 = sphi %s800_s14, %s1129_s14   ;;  %s762_s13 = sphi %s798_s13, %s1128_s13   ;;  %s758_s12 = sphi %s796_s12, %s1127_s12  }
   0x8   : > { %p41_p0 = scmp.ne.s32.totalorder %s762_s13, %s758_s12  ;;  %p1109_p1 = scmp.eq.s32.totalorder %s817_s16, 0 }
   0x9   : > { %p113_p3 = scmp.eq.s32.totalorder %s513_s17, 1  ;;  %p514_p5 = scmp.ge.s32.totalorder %s770_s15, 1 }
   0xa   : > { %p826_p4 = por %p1109_p1, %p41_p0  ;;  %p120_p7 = scmp.lt.s32.totalorder %s770_s15, 3 }
   0xb   : > { %p831_p6 = por %p113_p3, %p41_p0  ;;  %s133_s22 = sshll.u32 %s1106_s1, 4  ;;  %s134_s22 = int_to_ptr.vmem [resolvable:$true] %s133_s22 }
   0xc   : > { %s1112_s18 = scalar_select %p826_p4, 1, 0 }
   0xd   : > { %s1113_s19 = scalar_select %p831_p6, 1, 0 }
   0xe   : > { %p839_p8 = pnand %p514_p5, %p120_p7  ;;  %s144_s26 = sshll.u32 %s1107_s2, 4  ;;  %s145_s26 = int_to_ptr.vmem [resolvable:$true] %s144_s26 }
   0xf   : > { %s856_s28 = sadd.s32 1, %s770_s15   ;;  %s636_s30 = scalar_lea.vmem %s134_s22, 16 }
  0x10   : > { %s1114_s23 = scalar_select %p839_p8, 1, 0 }
  0x11   : > { %p563_p10 = pneg %p839_p8  ;;  %s25_s29 = ssub.s32 %s770_s15, %s856_s28 }
  0x12   : > { %p637_p12 = scmp.ne.s32.totalorder %s134_s22, %s636_s30  ;;  %p644_p5 = scmp.lt.s32.totalorder %s134_s22, %s134_s22 }
  0x13   : > { %p851_p11 = pnand %p563_p10, %p1109_p1  ;;  %p645_p7 = scmp.lt.s32.totalorder %s636_s30, %s636_s30 }
  0x15   : > { %p638_p13 = pneg %p851_p11  ;;  %p646_p9 = por %p645_p7, %p644_p5 }
  0x17   : > { %p639_p0 = pnand %p638_p13, %p637_p12 }
  0x19   : > { %p640_p3 = pneg %p639_p0 }
  0x1b   : > { %p647_p2 = pnand %p646_p9, %p640_p3 }
  0x1d   : > { %650 = shalt.err (!%p647_p2)
}
  0x1e   : > { %s772_s4 = smov [#allocation6]   ;;  %s651_s5 = scalar_lea.vmem %s145_s26, 16 }
  0x1f   : > { %566 = dma.vmem_to_smem (!%p851_p11), %s134_s22, 16, %s772_s4, [#allocation5]  }
  0x20   : > { %p652_p10 = scmp.ne.s32.totalorder %s145_s26, %s651_s5  ;;  %p659_p4 = scmp.lt.s32.totalorder %s145_s26, %s145_s26 }
  0x21   : > { %p660_p8 = scmp.lt.s32.totalorder %s651_s5, %s651_s5 }
  0x22   : > { %p654_p1 = pnand %p652_p10, %p638_p13 }
  0x23   : > { %p661_p12 = por %p660_p8, %p659_p4 }
  0x24   : > { %p655_p6 = pneg %p654_p1 }
  0x26   : > { %p662_p0 = pnand %p661_p12, %p655_p6 }
  0x28   : > { %665 = shalt.err (!%p662_p0)
}
  0x29   : > { %s773_s6 = smov [#allocation7]   ;;  %p26_p2 = scmp.eq.s32.totalorder %s25_s29, 0 }
  0x2a   : > { %569 = dma.vmem_to_smem (!%p851_p11), %s145_s26, 16, %s773_s6, [#allocation8]  }
  0x2b   : > { %s28_s7 = sadd.s32 1, %s766_s14  ;;  %p35_p1 = scmp.ne.s32.totalorder %s766_s14, %s762_s13 }
  0x2c   : > { %p36_p9 = scmp.eq.s32.totalorder %s770_s15, 0  ;;  %p1116_p6 = scmp.eq.s32.totalorder %s817_s16, 1 }
  0x2d   : > { %s871_s8 = scalar_select %p26_p2, %s766_s14, %s28_s7  }
  0x2e   : > { %p37_p4 = por %p36_p9, %p35_p1  ;;  %p875_p8 = por %p1116_p6, %p35_p1 }
  0x2f   : > { %p580_p13 = scmp.lt.s32.totalorder %s770_s15, 2  ;;  %s155_s10 = sand.u32 1, %s766_s14  }
  0x30   : > { %s518_s11 = sshll.u32 %s155_s10, 6  ;;  %s549_s17 = sshll.u32 %s770_s15, 10 }
  0x31   : > { %s885_s22 = scalar_lea.hbm %s1105_s0, %s549_s17  ;;  %s159_s24 = scalar_lea.vmem [#allocation2], %s518_s11 }
  0x32   : > { %s167_s25 = sshll.u32 %s159_s24, 4  ;;  %p889_p11 = pnand %p580_p13, %p37_p4  ;;  %s887_s25 = int_to_ptr.vmem [resolvable:$true] %s167_s25 }
  0x33   : > { %s156_s27 = scalar_lea.sflag [#allocation3], %s155_s10  ;;  %s666_s29 = scalar_lea.hbm %s885_s22, 1024 }
  0x34   : > { %p667_p3 = scmp.ne.s32.totalorder %s885_s22, %s666_s29  ;;  %p668_p5 = pneg %p889_p11 }
  0x35   : > { %s671_s5 = scalar_lea.hbm %s1105_s0, 2048  ;;  %p672_p12 = scmp.lt.u32.totalorder %s885_s22, %s1105_s0 }
  0x36   : > { %p669_p7 = pnand %p668_p5, %p667_p3  ;;  %p673_p0 = scmp.lt.u32.totalorder %s671_s5, %s666_s29 }
  0x37   : > { %p675_p1 = scmp.lt.u32.totalorder %s666_s29, %s885_s22 }
  0x38   : > { %p670_p10 = pneg %p669_p7  ;;  %p674_p2 = por %p673_p0, %p672_p12 }
  0x3a   : > { %p676_p9 = por %p675_p1, %p674_p2 }
  0x3c   : > { %p677_p4 = pnand %p676_p9, %p670_p10 }
  0x3e   : > { %680 = shalt.err (!%p677_p4)
}
  0x3f   : > { %s681_s10 = scalar_lea.vmem %s887_s25, 1024  ;;  %s774_s11 = smov [#allocation2]  }
  0x40   : > { %p682_p6 = scmp.ne.s32.totalorder %s887_s25, %s681_s10  ;;  %s686_s17 = sshll.u32 %s774_s11, 4  ;;  %s687_s17 = int_to_ptr.vmem [resolvable:$false] %s686_s17 }
  0x41   : > { %s688_s20 = scalar_lea.vmem %s687_s17, 2048  ;;  %p689_p7 = scmp.lt.s32.totalorder %s887_s25, %s687_s17 }
  0x42   : > { %p684_p13 = pnand %p682_p6, %p668_p5  ;;  %p690_p12 = scmp.lt.s32.totalorder %s688_s20, %s681_s10 }
  0x44   : > { %p685_p3 = pneg %p684_p13  ;;  %p691_p0 = por %p690_p12, %p689_p7 }
  0x46   : > { %p692_p2 = pnand %p691_p0, %p685_p3 }
  0x48   : > { %695 = shalt.err (!%p692_p2)
}
  0x49   : > { %573 = dma.hbm_to_vmem [thread:$0]  (!%p889_p11), %s885_s22, 1024, %s887_s25, %s156_s27  }
  0x4a   : > { %p1119_p10 = scmp.ne.s32.totalorder %s1114_s23, 0 }
  0x4b   : > { %s921_s21 = sand.u32 (!%p1119_p10), 1, %s762_s13   ;;  %p1120_p5 = scmp.ne.s32.totalorder (!%p1119_p10), %s1112_s18, 0 }
  0x4c   : > { %176 = sbr.rel (%p1119_p10) target bundleno = 475 (0x1db), region = 32  ;;  %s522_s24 = sshll.u32 (!%p1119_p10), %s921_s21, 6 }
  0x4d   : > { %s179_s29 = scalar_lea.sflag (!%p1119_p10), [#allocation3], %s921_s21  ;;  %s182_s30 = scalar_lea.vmem (!%p1119_p10), [#allocation2], %s522_s24 }
  0x53   : > { %741 = dma.done.wait (%p1120_p5), %s179_s29, 1024  }
  0x54   : > { %743 = vsyncadd (%p1120_p5), %s179_s29, 4294966272  ;;  %p1121_p11 = scmp.eq.s32.totalorder %s817_s16, 0 }
  0x56   : > { %745 = dma.done.wait (%p1121_p11), [#allocation5], 16   ;;  %p1122_p1 = pmov %p1121_p11 }
  0x58   : > { %747 = vsyncadd (%p1122_p1), [#allocation5], 4294967280  ;;  %p1123_p9 = pmov %p1122_p1 }
  0x59   : > { %p1124_p4 = pmov %p1122_p1 }
  0x5a   : > { %749 = dma.done.wait (%p1123_p9), [#allocation8], 16  }
  0x5b   : > { %751 = vsyncadd (%p1124_p4), [#allocation8], 4294967280 }
  0x5c   : > { %195 = sfence }
  0x5d   : > { %s216_s23 = sld [smem:[#allocation6]]  ;;  %s526_s22 = sld [smem:[#allocation6 + $0x1]]  ;;  %v939_v0 = vld [vmem:[%s182_s30] sm:$0xff]  ;;  %v945_v1 = vld [vmem:[%s182_s30 + $0x8] sm:$0xff]  ;;  %v947_v2 = vld [vmem:[%s182_s30 + $0x10] sm:$0xff] }
  0x5e   : > { %s527_s25 = sld [smem:[#allocation6 + $0x2]]  ;;  %s528_s26 = sld [smem:[#allocation6 + $0x3]]  ;;  %v953_v3 = vld [vmem:[%s182_s30 + $0x18] sm:$0xff]  ;;  %v955_v4 = vld [vmem:[%s182_s30 + $0x20] sm:$0xff]  ;;  %v961_v6 = vld [vmem:[%s182_s30 + $0x28] sm:$0xff] }
  0x5f   : > { %s941_s18 = sld [smem:[#allocation7]]  ;;  %s949_s4 = sld [smem:[#allocation6 + $0x9]]  ;;  %v963_v7 = vld [vmem:[%s182_s30 + $0x30] sm:$0xff]  ;;  %v965_v8 = vld [vmem:[%s182_s30 + $0x38] sm:$0xff] }
  0x60   : > { %s943_s27 = sld [smem:[#allocation6 + $0x8]]  ;;  %s951_s5 = sld [smem:[#allocation6 + $0xa]] }
  0x61   : > { %s957_s6 = sld [smem:[#allocation6 + $0xb]]  ;;  %s959_s7 = sld [smem:[#allocation7 + $0x2]] }
  0x62   : > { %s969_s10 = sld [smem:[#allocation6 + $0x4]]  ;;  %s971_s11 = sld [smem:[#allocation6 + $0x5]] }
  0x63   : > { %v217_v5 = vstv %s216_s23  ;;  %v223_v11 = vstv %s526_s22  ;;  %s985_s17 = sld [smem:[#allocation6 + $0x6]]  ;;  %s987_s20 = sld [smem:[#allocation6 + $0x7]] }
  0x64   : > { %v218_v9 = vmul.f32 %v217_v5, %v939_v0  ;;  %v219_v10 = vmul.f32 %v217_v5, %v945_v1  ;;  %v224_v12 = vmul.f32 %v223_v11, %v947_v2  ;;  %v225_v13 = vmul.f32 %v223_v11, %v953_v3  ;;  %s995_s29 = sld [smem:[#allocation7 + $0x1]]  ;;  %s997_s30 = sld [smem:[#allocation6 + $0xc]] }
  0x65   : > { %v231_v14 = vstv %s527_s25  ;;  %v239_v15 = vstv %s528_s26  ;;  %v245_v22 = vstv %s941_s18  ;;  %v290_v26 = vstv %s949_s4  ;;  %s1003_s23 = sld [smem:[#allocation6 + $0xd]]  ;;  %s1013_s22 = sld [smem:[#allocation6 + $0xe]] }
  0x66   : > { %v232_v16 = vmul.f32 %v231_v14, %v955_v4  ;;  %v233_v17 = vmul.f32 %v231_v14, %v961_v6  ;;  %v240_v18 = vmul.f32 %v239_v15, %v963_v7  ;;  %v241_v19 = vmul.f32 %v239_v15, %v965_v8  ;;  %s1015_s25 = sld [smem:[#allocation6 + $0xf]]  ;;  %s1034_s26 = sld [smem:[#allocation7 + $0x3]] }
  0x67   : > { %v226_v20 = vadd.f32 %v224_v12, %v218_v9  ;;  %v227_v21 = vadd.f32 %v225_v13, %v219_v10  ;;  %v286_v23 = vstv %s943_s27  ;;  %v296_v27 = vstv %s951_s5  ;;  %s550_s18 = sshll.u32 %s817_s16, 10  ;;  %s213_s27 = scalar_lea.vmem [#allocation9], %s522_s24 }
  0x68   : > { %v287_v24 = vmul.f32 %v286_v23, %v939_v0  ;;  %v288_v25 = vmul.f32 %v286_v23, %v945_v1  ;;  %v291_v30 = vmul.f32 %v290_v26, %v947_v2  ;;  %v292_v31 = vmul.f32 %v290_v26, %v953_v3  ;;  %s421_s4 = sshll.u32 %s213_s27, 4  ;;  %s407_s16 = scalar_lea.sflag [#allocation4], %s921_s21  ;;  %s1063_s4 = int_to_ptr.vmem [resolvable:$true] %s421_s4 }
  0x69   : > { %v234_v28 = vadd.f32 %v232_v16, %v226_v20  ;;  %v235_v29 = vadd.f32 %v233_v17, %v227_v21  ;;  %v297_v32 = vmul.f32 %v296_v27, %v955_v4  ;;  %v298_v33 = vmul.f32 %v296_v27, %v961_v6  ;;  %s696_s24 = scalar_lea.vmem %s1063_s4, 1024 }
  0x6a   : > { %v302_v34 = vstv %s957_s6  ;;  %v308_v35 = vstv %s959_s7  ;;  %v293_v38 = vadd.f32 %v291_v30, %v287_v24  ;;  %v294_v39 = vadd.f32 %v292_v31, %v288_v25  ;;  %s1061_s7 = scalar_lea.hbm %s1108_s3, %s550_s18  ;;  %p697_p6 = scmp.ne.s32.totalorder %s1063_s4, %s696_s24 }
  0x6b   : > { %v242_v36 = vadd.f32 %v240_v18, %v234_v28  ;;  %v243_v37 = vadd.f32 %v241_v19, %v235_v29  ;;  %v303_v40 = vmul.f32 %v302_v34, %v963_v7  ;;  %v304_v41 = vmul.f32 %v302_v34, %v965_v8 }
  0x6c   : > { %v254_v42 = vstv %s969_s10  ;;  %v258_v43 = vstv %s971_s11  ;;  %v299_v46 = vadd.f32 %v297_v32, %v293_v38  ;;  %v300_v47 = vadd.f32 %v298_v33, %v294_v39  ;;  %p698_p13 = pnand %p697_p6, %p875_p8  ;;  %s775_s10 = smov [#allocation9]  }
  0x6d   : > { %v1005_v44 = vadd.f32 %v245_v22, %v242_v36  ;;  %v1007_v45 = vadd.f32 %v245_v22, %v243_v37  ;;  %v255_v48 = vmul.f32 %v254_v42, %v939_v0  ;;  %v256_v49 = vmul.f32 %v254_v42, %v945_v1  ;;  %s700_s11 = sshll.u32 %s775_s10, 4  ;;  %s701_s11 = int_to_ptr.vmem [resolvable:$false] %s700_s11 }
  0x6e   : > { %v259_v50 = vmul.f32 %v258_v43, %v947_v2  ;;  %v260_v51 = vmul.f32 %v258_v43, %v953_v3  ;;  %v305_v54 = vadd.f32 %v303_v40, %v299_v46  ;;  %v306_v55 = vadd.f32 %v304_v41, %v300_v47  ;;  %p699_p3 = pneg %p698_p13  ;;  %p703_p7 = scmp.lt.s32.totalorder %s1063_s4, %s701_s11 }
  0x6f   : > { %v248_v52 = vmax.f32 %v1005_v44, 0.0  ;;  %v249_v53 = vmax.f32 %v1007_v45, 0.0  ;;  %v264_v58 = vstv %s985_s17  ;;  %v270_v59 = vstv %s987_s20  ;;  %s702_s17 = scalar_lea.vmem %s701_s11, 2048 }
  0x70   : > { %v261_v56 = vadd.f32 %v259_v50, %v255_v48  ;;  %v262_v57 = vadd.f32 %v260_v51, %v256_v49  ;;  %v1025_v61 = vadd.f32 %v308_v35, %v305_v54  ;;  %v1027_v62 = vadd.f32 %v308_v35, %v306_v55  ;;  %p704_p12 = scmp.lt.s32.totalorder %s702_s17, %s696_s24 }
  0x71   : > { %v250_v60 = vmax.f32 %v248_v52, %v249_v53  ;;  %v265_v63 = vmul.f32 %v264_v58, %v955_v4  ;;  %v266_v5 = vmul.f32 %v264_v58, %v961_v6  ;;  %v271_v9 = vmul.f32 %v270_v59, %v963_v7 }
  0x72   : > { %v272_v10 = vmul.f32 %v270_v59, %v965_v8  ;;  %v276_v11 = vstv %s995_s29  ;;  %v311_v12 = vmax.f32 %v1025_v61, 0.0  ;;  %v312_v13 = vmax.f32 %v1027_v62, 0.0  ;;  %p705_p0 = por %p704_p12, %p703_p7 }
  0x73   : > { %251 = vmax.xlane.f32.xlu0 %v250_v60  ;;  %v267_v14 = vadd.f32 %v265_v63, %v261_v56  ;;  %v318_v15 = vstv %s997_s30  ;;  %v268_v16 = vadd.f32 %v266_v5, %v262_v57  ;;  %v322_v19 = vstv %s1003_s23 }
  0x74   : > { %v319_v17 = vmul.f32 %v318_v15, %v939_v0  ;;  %v320_v18 = vmul.f32 %v318_v15, %v945_v1  ;;  %v313_v20 = vmax.f32 %v311_v12, %v312_v13  ;;  %v323_v22 = vmul.f32 %v322_v19, %v947_v2  ;;  %p706_p2 = pnand %p705_p0, %p699_p3 }
  0x75   : > { %v273_v21 = vadd.f32 %v271_v9, %v267_v14  ;;  %v324_v23 = vmul.f32 %v322_v19, %v953_v3  ;;  %v274_v24 = vadd.f32 %v272_v10, %v268_v16  ;;  %v328_v25 = vstv %s1013_s22 }
  0x76   : > { %v334_v26 = vstv %s1015_s25  ;;  %314 = vmax.xlane.f32.xlu1 %v313_v20  ;;  %v325_v28 = vadd.f32 %v323_v22, %v319_v17  ;;  %v329_v30 = vmul.f32 %v328_v25, %v955_v4  ;;  %v330_v1 = vmul.f32 %v328_v25, %v961_v6 }
  0x77   : > { %v277_v27 = vadd.f32 %v276_v11, %v273_v21  ;;  %v326_v29 = vadd.f32 %v324_v23, %v320_v18  ;;  %v278_v0 = vadd.f32 %v276_v11, %v274_v24  ;;  %v335_v31 = vmul.f32 %v334_v26, %v963_v7 }
  0x78   : > { %v336_v32 = vmul.f32 %v334_v26, %v965_v8  ;;  %v331_v33 = vadd.f32 %v329_v30, %v325_v28  ;;  %v340_v35 = vstv %s1034_s26 }
  0x79   : > { %v279_v2 = vmax.f32 %v277_v27, 0.0  ;;  %v280_v3 = vmax.f32 %v278_v0, 0.0  ;;  %v332_v34 = vadd.f32 %v330_v1, %v326_v29 }
  0x7a   : > { %v337_v36 = vadd.f32 %v335_v31, %v331_v33 }
  0x7b   : > { %v281_v37 = vmax.f32 %v279_v2, %v280_v3  ;;  %v338_v38 = vadd.f32 %v336_v32, %v332_v34 }
  0x7c   : > { %v341_v39 = vadd.f32 %v340_v35, %v337_v36 }
  0x7d   : > { %282 = vmax.xlane.f32.xlu0 %v281_v37  ;;  %v342_v40 = vadd.f32 %v340_v35, %v338_v38 }
  0x7e   : > { %v343_v41 = vmax.f32 %v341_v39, 0.0 }
  0x7f   : > { %v344_v4 = vmax.f32 %v342_v40, 0.0 }
  0x81   : > { %v345_v42 = vmax.f32 %v343_v41, %v344_v4 }
  0x83   : > { %346 = vmax.xlane.f32.xlu1 %v345_v42 }
 0x100   : > { %v252_v6 = vpop.xlane.xlu0 %251 }
 0x103   : > { %v315_v43 = vpop.xlane.xlu1 %314 }
 0x10a   : > { %v283_v7 = vpop.xlane.xlu0 %282 }
 0x10b   : > { %v284_v46 = vmax.f32 %v252_v6, %v283_v7 }
 0x10d   : > { %v316_v8 = vmax.f32 %v284_v46, %v315_v43 }
 0x110   : > { %v347_v47 = vpop.xlane.xlu1 %346 }
 0x111   : > { %v348_v48 = vmax.f32 %v316_v8, %v347_v47 }
 0x113   : > { %v359_v49 = vsub.f32 %v279_v2, %v348_v48  ;;  %v360_v50 = vsub.f32 %v280_v3, %v348_v48  ;;  %v349_v51 = vsub.f32 %v248_v52, %v348_v48  ;;  %v350_v54 = vsub.f32 %v249_v53, %v348_v48 }
 0x114   : > { %v379_v55 = vsub.f32 %v343_v41, %v348_v48  ;;  %v380_v56 = vsub.f32 %v344_v4, %v348_v48  ;;  %v369_v60 = vsub.f32 %v311_v12, %v348_v48  ;;  %v370_v62 = vsub.f32 %v312_v13, %v348_v48 }
 0x115   : > { %v361_v57 = vmul.f32 1.442695, %v359_v49  ;;  %v363_v58 = vmul.f32 1.442695, %v360_v50  ;;  %v351_v59 = vmul.f32 1.442695, %v349_v51 }
 0x116   : > { %v353_v61 = vmul.f32 1.442695, %v350_v54  ;;  %v381_v63 = vmul.f32 1.442695, %v379_v55  ;;  %v383_v5 = vmul.f32 1.442695, %v380_v56 }
 0x117   : > { %618 = vpow2.f32 %v361_v57  ;;  %v371_v9 = vmul.f32 1.442695, %v369_v60  ;;  %v373_v44 = vmul.f32 1.442695, %v370_v62 }
 0x118   : > { %620 = vpow2.f32 %v363_v58 }
 0x119   : > { %622 = vpow2.f32 %v351_v59 }
 0x11a   : > { %624 = vpow2.f32 %v353_v61 }
 0x11b   : > { %626 = vpow2.f32 %v381_v63 }
 0x11c   : > { %628 = vpow2.f32 %v383_v5 }
 0x11d   : > { %630 = vpow2.f32 %v371_v9 }
 0x11e   : > { %632 = vpow2.f32 %v373_v44 }
 0x121   : > { %v619_v45 = vpop.eup %618 }
 0x122   : > { %v621_v52 = vpop.eup %620 }
 0x123   : > { %v623_v53 = vpop.eup %622  ;;  %v365_v10 = vadd.f32 %v621_v52, %v619_v45 }
 0x124   : > { %v625_v11 = vpop.eup %624 }
 0x125   : > { %v627_v12 = vpop.eup %626  ;;  %366 = vadd.xlane.f32.xlu1 %v365_v10  ;;  %v355_v13 = vadd.f32 %v625_v11, %v623_v53 }
 0x126   : > { %v629_v14 = vpop.eup %628 }
 0x127   : > { %v631_v15 = vpop.eup %630  ;;  %356 = vadd.xlane.f32.xlu0 %v355_v13  ;;  %v385_v16 = vadd.f32 %v629_v14, %v627_v12 }
 0x128   : > { %v633_v17 = vpop.eup %632 }
 0x129   : > { %386 = vadd.xlane.f32.xlu1 %v385_v16  ;;  %v375_v18 = vadd.f32 %v633_v17, %v631_v15 }
 0x12b   : > { %376 = vadd.xlane.f32.xlu0 %v375_v18 }
 0x1b2   : > { %v367_v19 = vpop.xlane.xlu1 %366 }
 0x1b4   : > { %v357_v20 = vpop.xlane.xlu0 %356 }
 0x1b5   : > { %v368_v21 = vadd.f32 %v367_v19, %v357_v20 }
 0x1b6   : > { %v387_v24 = vpop.xlane.xlu1 %386 }
 0x1b8   : > { %v377_v22 = vpop.xlane.xlu0 %376 }
 0x1b9   : > { %v378_v23 = vadd.f32 %v377_v22, %v368_v21 }
 0x1bb   : > { %v388_v25 = vadd.f32 %v387_v24, %v378_v23 }
 0x1bd   : > { %634 = vrcp.f32 %v388_v25 }
 0x1c7   : > { %v635_v26 = vpop.eup %634 }
 0x1c8   : > { %v390_v27 = vmul.f32 %v635_v26, %v623_v53  ;;  %v391_v28 = vmul.f32 %v635_v26, %v625_v11  ;;  %v394_v29 = vmul.f32 %v635_v26, %v619_v45  ;;  %v395_v30 = vmul.f32 %v635_v26, %v621_v52 }
 0x1c9   : > { %v398_v0 = vmul.f32 %v635_v26, %v631_v15  ;;  %v399_v1 = vmul.f32 %v635_v26, %v633_v17  ;;  %v402_v31 = vmul.f32 %v635_v26, %v627_v12  ;;  %v403_v32 = vmul.f32 %v635_v26, %v629_v14 }
 0x1ca   : > { %392 = vst [vmem:[%s213_s27] sm:$0xff] %v390_v27  ;;  %393 = vst [vmem:[%s213_s27 + $0x8] sm:$0xff] %v391_v28 }
 0x1cb   : > { %396 = vst [vmem:[%s213_s27 + $0x10] sm:$0xff] %v394_v29  ;;  %397 = vst [vmem:[%s213_s27 + $0x18] sm:$0xff] %v395_v30 }
 0x1cc   : > { %400 = vst [vmem:[%s213_s27 + $0x20] sm:$0xff] %v398_v0  ;;  %401 = vst [vmem:[%s213_s27 + $0x28] sm:$0xff] %v399_v1 }
 0x1cd   : > { %404 = vst [vmem:[%s213_s27 + $0x30] sm:$0xff] %v402_v31  ;;  %405 = vst [vmem:[%s213_s27 + $0x38] sm:$0xff] %v403_v32 }
 0x1ce   : > { %709 = shalt.err (!%p706_p2)
}
 0x1cf   : > { %s710_s21 = scalar_lea.hbm %s1061_s7, 1024  ;;  %s714_s30 = scalar_lea.hbm %s1108_s3, 2048 }
 0x1d0   : > { %p711_p10 = scmp.ne.s32.totalorder %s1061_s7, %s710_s21  ;;  %p715_p1 = scmp.lt.u32.totalorder %s1061_s7, %s1108_s3 }
 0x1d1   : > { %p716_p9 = scmp.lt.u32.totalorder %s714_s30, %s710_s21  ;;  %p718_p6 = scmp.lt.u32.totalorder %s710_s21, %s1061_s7 }
 0x1d2   : > { %p712_p5 = pnand %p711_p10, %p875_p8 }
 0x1d3   : > { %p717_p4 = por %p716_p9, %p715_p1 }
 0x1d4   : > { %p713_p11 = pneg %p712_p5 }
 0x1d5   : > { %p719_p13 = por %p718_p6, %p717_p4 }
 0x1d7   : > { %p720_p3 = pnand %p719_p13, %p713_p11 }
 0x1d9   : > { %723 = shalt.err (!%p720_p3)
}
 0x1da   : > { %561 = dma.vmem_to_hbm [thread:$0]  (%p875_p8), %s1063_s4, 1024, %s1061_s7, %s407_s16  }
 0x1db PF: > { %s433_s25 = sand.u32 1, %s758_s12   ;;  %p1125_p7 = scmp.ne.s32.totalorder %s1113_s19, 0 }
 0x1dc   : > { %p1126_p12 = scmp.ge.s32.totalorder %s770_s15, 2  ;;  %s434_s26 = scalar_lea.sflag [#allocation4], %s433_s25 }
 0x1de   : > { %p575_p0 = pnand %p1126_p12, %p1125_p7 }
 0x1e0   : > { %753 = dma.done.wait (!%p575_p0), %s434_s26, 1024  }
 0x1e1   : > { %755 = vsyncadd (!%p575_p0), %s434_s26, 4294966272  ;;  %p18_p2 = scmp.ge.s32.totalorder %s856_s28, 4   ;;  %s1127_s12 = smov %s762_s13 }
 0x1e2   : > { %s1128_s13 = smov %s766_s14  ;;  %s1129_s14 = smov %s871_s8 }
 0x1e3   : > { %s1130_s15 = smov %s856_s28  ;;  %20 = sbr.rel (!%p18_p2) target bundleno = 7 (0x7), region = 86 }
 0x1ea   :  { %439 = vsyncpa [#allocation3], 1 }
 0x1eb   :  { %441 = vsyncpa [#allocation3 + $0x1], 1 }
 0x1ec   :  { %442 = vsyncpa [#allocation4], 1 }
 0x1ed   :  { %444 = vsyncpa [#allocation4 + $0x1], 1 }
 0x1ee   :  { %445 = vsyncpa [#allocation5], 1 }
 0x1ef   :  { %447 = vsyncpa [#allocation5 + $0x1], 1 }
 0x1f0   :  { %448 = vsyncpa [#allocation8], 1 }

</bundles_post_ra>
